<compile_context>
chip_gen: v5e
topology: v5e:2x2
jax: 0.10.0
libtpu: 0.0.40
codegen_flags: <defaults>
</compile_context>

<pallas_src>
import jax
import jax.numpy as jnp
from jax import lax
from jax.experimental import pallas as pl
from jax.experimental.pallas import tpu as pltpu

_VMEM_SPEC = pl.BlockSpec(memory_space=pltpu.MemorySpace.VMEM)
_NS_ITERS = 20      # Newton-Schulz iterations (quadratic convergence after scaling)
_EPS = 1e-6         # diagonal regularization, mirrors the reference eps fallback


def _round_up(x, m):
    return ((x + m - 1) // m) * m


# ---------------------------------------------------------------------------
# Kernel 1: fused feature head + activation statistics
#   x tile  : (TILE_N, C*H*W)   w2 : (C*H*W, D)  (= w / HW, GAP folded into K)
#   outputs : mu (1, D), sigma (D, D)
def _make_feat_stats_kernel(n_real: int):
    inv_n = 1.0 / float(n_real)
    inv_nm1 = 1.0 / float(max(n_real - 1, 1))   # guard n == 1
    n_f = float(n_real)

    def kernel(x_ref, w2_ref, mu_ref, sigma_ref, sum_scr, xtx_scr):
        i = pl.program_id(0)

        @pl.when(i == 0)
        def _():
            sum_scr[...] = jnp.zeros_like(sum_scr)
            xtx_scr[...] = jnp.zeros_like(xtx_scr)

        # GAP + projection in one MXU matmul (K = C*H*W).
        feats = jnp.dot(x_ref[...], w2_ref[...],
                        preferred_element_type=jnp.float32)        # (TILE_N, D)

        sum_scr[...] += jnp.sum(feats, axis=0, keepdims=True)       # (1, D)
        # feats^T @ feats without materializing a transpose.
        xtx_scr[...] += lax.dot_general(
            feats, feats,
            dimension_numbers=(((0,), (0,)), ((), ())),
            preferred_element_type=jnp.float32)                     # (D, D)

        @pl.when(i == pl.num_programs(0) - 1)
        def _():
            mu = sum_scr[...] * inv_n                                # (1, D)
            outer = lax.dot_general(
                mu, mu, dimension_numbers=(((0,), (0,)), ((), ())),
                preferred_element_type=jnp.float32)                  # (D, D)
            sigma_ref[...] = (xtx_scr[...] - n_f * outer) * inv_nm1
            mu_ref[...] = mu

    return kernel


def features_and_statistics(x_nchw, w, batch_size):
    """Stream the whole NCHW batch through one gridded kernel; return (mu, sigma)."""
    n, c, h, wd = x_nchw.shape
    hw = h * wd
    chw = c * hw
    d = w.shape[1]

    tile_n = min(128, _round_up(max(min(batch_size, n), 1), 8))
    n_pad = _round_up(n, tile_n)

    # Fold the global-average-pool into the projection weights: W2[c*hw, d] = w[c, d]/HW.
    w2 = jnp.repeat(w.astype(jnp.float32), hw, axis=0) / float(hw)   # (C*HW, D)
    x2 = x_nchw.reshape(n, chw).astype(jnp.float32)
    if n_pad != n:
        # Zero rows project to zero features and contribute nothing to the sums.
        x2 = jnp.pad(x2, ((0, n_pad - n), (0, 0)))

    mu, sigma = pl.pallas_call(
        _make_feat_stats_kernel(n),
        out_shape=(jax.ShapeDtypeStruct((1, d), jnp.float32),
                   jax.ShapeDtypeStruct((d, d), jnp.float32)),
        grid_spec=pltpu.PrefetchScalarGridSpec(
            num_scalar_prefetch=0,
            grid=(n_pad // tile_n,),
            in_specs=[pl.BlockSpec((tile_n, chw), lambda i: (i, 0)),
                      pl.BlockSpec((chw, d), lambda i: (0, 0))],
            out_specs=(pl.BlockSpec((1, d), lambda i: (0, 0)),
                       pl.BlockSpec((d, d), lambda i: (0, 0))),
            scratch_shapes=[pltpu.VMEM((1, d), jnp.float32),
                            pltpu.VMEM((d, d), jnp.float32)]),
        compiler_params=pltpu.CompilerParams(
            dimension_semantics=("arbitrary",)),      # batch axis is a reduction
    )(x2, w2)
    return mu, sigma


# ---------------------------------------------------------------------------
# Kernel 2: Frechet distance with symmetric Newton-Schulz matrix square root.
def _ns_sqrt(a, diag, eye):
    """Matrix square root of a symmetric PSD matrix via coupled Newton-Schulz."""
    norm = jnp.sqrt(jnp.sum(a * a)) + 1e-30
    y0 = a / norm

    def body(_, carry):
        y, z = carry
        zy = jnp.dot(z, y, preferred_element_type=jnp.float32)
        nzy = -0.5 * zy
        t = jnp.where(diag, nzy + 1.5, nzy)      # 0.5*(3I - ZY) without a 3*eye slab
        y = jnp.dot(y, t, preferred_element_type=jnp.float32)
        z = jnp.dot(t, z, preferred_element_type=jnp.float32)
        return y, z

    y, _ = lax.fori_loop(0, _NS_ITERS, body, (y0, eye))
    # Re-symmetrize and undo the Frobenius scaling.
    return 0.5 * (y + y.T) * jnp.sqrt(norm)


def _fid_kernel(mu1_ref, s1_ref, mu2_ref, s2_ref, o_ref):
    mu1, mu2 = mu1_ref[...], mu2_ref[...]
    s1, s2 = s1_ref[...], s2_ref[...]
    d = s1.shape[0]

    # Diagonal mask built once, reused for eye, traces and the NS update.
    rows = lax.broadcasted_iota(jnp.int32, (d, d), 0)
    cols = lax.broadcasted_iota(jnp.int32, (d, d), 1)
    diag = rows == cols
    eye = jnp.where(diag, 1.0, 0.0).astype(jnp.float32)

    diff = mu1 - mu2
    diff_sq = jnp.sum(diff * diff)
    tr_s1 = jnp.sum(jnp.where(diag, s1, 0.0))
    tr_s2 = jnp.sum(jnp.where(diag, s2, 0.0))

    # tr(sqrtm(s1 @ s2)) == tr(sqrtm(s1^1/2 @ s2 @ s1^1/2))  (similar matrices),
    # computed entirely on symmetric PSD matrices for NS stability.
    a1 = s1 + _EPS * eye
    a2 = s2 + _EPS * eye
    sqrt_a1 = _ns_sqrt(a1, diag, eye)
    c = jnp.dot(jnp.dot(sqrt_a1, a2, preferred_element_type=jnp.float32),
                sqrt_a1, preferred_element_type=jnp.float32)
    c = 0.5 * (c + c.T)
    sqrt_c = _ns_sqrt(c, diag, eye)
    tr_covmean = jnp.sum(jnp.where(diag, sqrt_c, 0.0))

    fd = diff_sq + tr_s1 + tr_s2 - 2.0 * tr_covmean
    o_ref[...] = jnp.reshape(fd, (1, 1))


def frechet_distance(mu1, sigma1, mu2, sigma2):
    out = pl.pallas_call(
        _fid_kernel,
        out_shape=jax.ShapeDtypeStruct((1, 1), jnp.float32),
        in_specs=[_VMEM_SPEC] * 4,
        out_specs=_VMEM_SPEC,
    )(mu1, sigma1, mu2, sigma2)
    return out[0, 0]


# ---------------------------------------------------------------------------
class FID:
    """Pallas port of the PyTorch FID module (synthetic feature head)."""

    def __init__(self, batch_size: int = 128, dims: int = 2048, channels: int = 4):
        self.batch_size = batch_size
        self.dims = dims
        # Deterministic "inception" projection weights (synthetic, not a checkpoint).
        key = jax.random.PRNGKey(0)
        self.w = (jax.random.normal(key, (channels, dims), dtype=jnp.float32)
                  / jnp.sqrt(jnp.float32(channels)))

    def _compute_statistics(self, x):
        return features_and_statistics(x, self.w, self.batch_size)

    def __call__(self, x1, x2):
        mu1, s1 = self._compute_statistics(x1)
        mu2, s2 = self._compute_statistics(x2)
        return frechet_distance(mu1, s1, mu2, s2)


if __name__ == "__main__":
    key = jax.random.PRNGKey(0)
    k1, k2 = jax.random.split(key)
    # small NCHW inputs: batch=8, channels=4, spatial=16x16
    x1 = jax.random.normal(k1, (8, 4, 16, 16), dtype=jnp.float32)
    x2 = jax.random.normal(k2, (8, 4, 16, 16), dtype=jnp.float32) + 0.5

    # dims=128 keeps every matmul / store lane-dense (multiple of 128).
    fid_module = FID(batch_size=8, dims=128, channels=4)
    fid = fid_module(x1, x2)
    jax.block_until_ready(fid)
    assert jnp.isfinite(fid), f"FID is not finite: {fid}"
    print("KERNEL_OK")
</pallas_src>

<mosaic_0001>
module attributes {stable_mosaic.version = 11 : i64} {
  func.func @kernel(%arg0: i32, %arg1: memref<8x1024xf32, #tpu.memory_space<vmem>>, %arg2: memref<1024x128xf32, #tpu.memory_space<vmem>>, %arg3: memref<1x128xf32, #tpu.memory_space<vmem>>, %arg4: memref<128x128xf32, #tpu.memory_space<vmem>>, %arg5: memref<1x128xf32, #tpu.memory_space<vmem>>, %arg6: memref<128x128xf32, #tpu.memory_space<vmem>>) attributes {dimension_semantics = [#tpu.dimension_semantics<arbitrary>], iteration_bounds = array<i64: 1>, scalar_prefetch = 0 : i64, scratch_operands = 2 : i64, tpu.core_type = #tpu.core_type<tc>, window_params = [{transform_indices = @transform_0, window_bounds = array<i64: 8, 1024>}, {pipeline_mode = #tpu.pipeline_mode<synchronous>, transform_indices = @transform_1, window_bounds = array<i64: 1024, 128>}, {pipeline_mode = #tpu.pipeline_mode<synchronous>, transform_indices = @transform_2, window_bounds = array<i64: 1, 128>}, {pipeline_mode = #tpu.pipeline_mode<synchronous>, transform_indices = @transform_3, window_bounds = array<i64: 128, 128>}]} {
    %c0_i32 = arith.constant 0 : i32
    %0 = arith.cmpi eq, %arg0, %c0_i32 : i32
    %1 = arith.extui %0 : i1 to i32
    %c0_i32_0 = arith.constant 0 : i32
    %2 = arith.cmpi ne, %1, %c0_i32_0 : i32
    scf.if %2 {
      %cst_16 = arith.constant 0.000000e+00 : f32
      %18 = vector.broadcast %cst_16 : f32 to vector<1x128xf32>
      %c0_17 = arith.constant 0 : index
      %c0_18 = arith.constant 0 : index
      %19 = vector.load %arg5[%c0_17, %c0_18] : memref<1x128xf32, #tpu.memory_space<vmem>>, vector<1x128xf32>
      tpu.vector_store %arg5[%c0_17, %c0_18], %18 {strides = array<i32>} : memref<1x128xf32, #tpu.memory_space<vmem>>, vector<1x128xf32>,
      %cst_19 = arith.constant 0.000000e+00 : f32
      %20 = vector.broadcast %cst_19 : f32 to vector<128x128xf32>
      %c0_20 = arith.constant 0 : index
      %c0_21 = arith.constant 0 : index
      %21 = vector.load %arg6[%c0_20, %c0_21] : memref<128x128xf32, #tpu.memory_space<vmem>>, vector<128x128xf32>
      tpu.vector_store %arg6[%c0_20, %c0_21], %20 {strides = array<i32>} : memref<128x128xf32, #tpu.memory_space<vmem>>, vector<128x128xf32>,
    } else {
    }
    %c0 = arith.constant 0 : index
    %c0_1 = arith.constant 0 : index
    %3 = vector.load %arg1[%c0, %c0_1] : memref<8x1024xf32, #tpu.memory_space<vmem>>, vector<8x1024xf32>
    %c0_2 = arith.constant 0 : index
    %c0_3 = arith.constant 0 : index
    %4 = vector.load %arg2[%c0_2, %c0_3] : memref<1024x128xf32, #tpu.memory_space<vmem>>, vector<1024x128xf32>
    %cst = arith.constant dense<0.000000e+00> : vector<8x128xf32>
    %5 = tpu.matmul %3, %4, %cst {dimension_numbers = #tpu.dot_dimension_numbers<[1], [0], [0], [1], [0, 0, 1, 1], [], []>} : vector<8x1024xf32>, vector<1024x128xf32>, vector<8x128xf32> -> vector<8x128xf32>
    %c0_4 = arith.constant 0 : index
    %c0_5 = arith.constant 0 : index
    %6 = vector.load %arg5[%c0_4, %c0_5] : memref<1x128xf32, #tpu.memory_space<vmem>>, vector<1x128xf32>
    %cst_6 = arith.constant dense<0.000000e+00> : vector<128xf32>
    %7 = vector.multi_reduction <add>, %5, %cst_6 [0] : vector<8x128xf32> to vector<128xf32>
    %8 = vector.shape_cast %7 : vector<128xf32> to vector<1x128xf32>
    %9 = arith.addf %6, %8 : vector<1x128xf32>
    %c0_7 = arith.constant 0 : index
    %c0_8 = arith.constant 0 : index
    %10 = vector.load %arg5[%c0_7, %c0_8] : memref<1x128xf32, #tpu.memory_space<vmem>>, vector<1x128xf32>
    tpu.vector_store %arg5[%c0_7, %c0_8], %9 {strides = array<i32>} : memref<1x128xf32, #tpu.memory_space<vmem>>, vector<1x128xf32>,
    %c0_9 = arith.constant 0 : index
    %c0_10 = arith.constant 0 : index
    %11 = vector.load %arg6[%c0_9, %c0_10] : memref<128x128xf32, #tpu.memory_space<vmem>>, vector<128x128xf32>
    %cst_11 = arith.constant dense<0.000000e+00> : vector<128x128xf32>
    %12 = tpu.matmul %5, %5, %cst_11 {dimension_numbers = #tpu.dot_dimension_numbers<[0], [0], [1], [1], [0, 1, 1, 1], [], []>} : vector<8x128xf32>, vector<8x128xf32>, vector<128x128xf32> -> vector<128x128xf32>
    %13 = arith.addf %11, %12 : vector<128x128xf32>
    %c0_12 = arith.constant 0 : index
    %c0_13 = arith.constant 0 : index
    %14 = vector.load %arg6[%c0_12, %c0_13] : memref<128x128xf32, #tpu.memory_space<vmem>>, vector<128x128xf32>
    tpu.vector_store %arg6[%c0_12, %c0_13], %13 {strides = array<i32>} : memref<128x128xf32, #tpu.memory_space<vmem>>, vector<128x128xf32>,
    %c0_i32_14 = arith.constant 0 : i32
    %15 = arith.cmpi eq, %arg0, %c0_i32_14 : i32
    %16 = arith.extui %15 : i1 to i32
    %c0_i32_15 = arith.constant 0 : i32
    %17 = arith.cmpi ne, %16, %c0_i32_15 : i32
    scf.if %17 {
      %c0_16 = arith.constant 0 : index
      %c0_17 = arith.constant 0 : index
      %18 = vector.load %arg5[%c0_16, %c0_17] : memref<1x128xf32, #tpu.memory_space<vmem>>, vector<1x128xf32>
      %cst_18 = arith.constant 1.250000e-01 : f32
      %19 = vector.broadcast %cst_18 : f32 to vector<1x128xf32>
      %20 = arith.mulf %18, %19 : vector<1x128xf32>
      %cst_19 = arith.constant dense<0.000000e+00> : vector<128x128xf32>
      %21 = tpu.matmul %20, %20, %cst_19 {dimension_numbers = #tpu.dot_dimension_numbers<[0], [0], [1], [1], [0, 1, 1, 1], [], []>} : vector<1x128xf32>, vector<1x128xf32>, vector<128x128xf32> -> vector<128x128xf32>
      %c0_20 = arith.constant 0 : index
      %c0_21 = arith.constant 0 : index
      %22 = vector.load %arg6[%c0_20, %c0_21] : memref<128x128xf32, #tpu.memory_space<vmem>>, vector<128x128xf32>
      %cst_22 = arith.constant 8.000000e+00 : f32
      %23 = vector.broadcast %cst_22 : f32 to vector<128x128xf32>
      %24 = arith.mulf %23, %21 : vector<128x128xf32>
      %25 = arith.subf %22, %24 : vector<128x128xf32>
      %cst_23 = arith.constant 0.142857149 : f32
      %26 = vector.broadcast %cst_23 : f32 to vector<128x128xf32>
      %27 = arith.mulf %25, %26 : vector<128x128xf32>
      %c0_24 = arith.constant 0 : index
      %c0_25 = arith.constant 0 : index
      %28 = vector.load %arg4[%c0_24, %c0_25] : memref<128x128xf32, #tpu.memory_space<vmem>>, vector<128x128xf32>
      tpu.vector_store %arg4[%c0_24, %c0_25], %27 {strides = array<i32>} : memref<128x128xf32, #tpu.memory_space<vmem>>, vector<128x128xf32>,
      %c0_26 = arith.constant 0 : index
      %c0_27 = arith.constant 0 : index
      %29 = vector.load %arg3[%c0_26, %c0_27] : memref<1x128xf32, #tpu.memory_space<vmem>>, vector<1x128xf32>
      tpu.vector_store %arg3[%c0_26, %c0_27], %20 {strides = array<i32>} : memref<1x128xf32, #tpu.memory_space<vmem>>, vector<1x128xf32>,
    } else {
    }
    return
  }
  func.func @transform_0(%arg0: i32) -> (i32, i32) {
    %c0_i32 = arith.constant 0 : i32
    %c0_i32_0 = arith.constant 0 : i32
    return %arg0, %c0_i32 : i32, i32
  }
  func.func @transform_1(%arg0: i32) -> (i32, i32) {
    %c0_i32 = arith.constant 0 : i32
    %c0_i32_0 = arith.constant 0 : i32
    %c0_i32_1 = arith.constant 0 : i32
    return %c0_i32, %c0_i32_0 : i32, i32
  }
  func.func @transform_2(%arg0: i32) -> (i32, i32) {
    %c0_i32 = arith.constant 0 : i32
    %c0_i32_0 = arith.constant 0 : i32
    %c0_i32_1 = arith.constant 0 : i32
    return %c0_i32, %c0_i32_0 : i32, i32
  }
  func.func @transform_3(%arg0: i32) -> (i32, i32) {
    %c0_i32 = arith.constant 0 : i32
    %c0_i32_0 = arith.constant 0 : i32
    %c0_i32_1 = arith.constant 0 : i32
    return %c0_i32, %c0_i32_0 : i32, i32
  }
}

</mosaic_0001>

<bundles_post_ra>
// kernel: tpu_custom_call.1
= control target key start
LH: loop header
LB: loop body
LE: loop exit
PB: predicated region body
PF: predicated region fallthrough
CT: control target
= control target key end

     0   :  { %9 = vsyncpa [#allocation5], 0  ;;  %s1060_s0 = inlined_call_operand.hbm [shape: f32[8,1024], index: 0, kind: input, shape index: {}]   ;;  %s1061_s1 = inlined_call_operand.hbm [shape: f32[1024,128], index: 1, kind: input, shape index: {}]   ;;  %s1062_s2 = inlined_call_operand.hbm [shape: f32[1,128], index: 2, kind: output, shape index: {0}]   ;;  %s1063_s3 = inlined_call_operand.hbm [shape: f32[128,128], index: 3, kind: output, shape index: {1}]  }
   0x1   :  { %10 = vsyncpa [#allocation8], 0 }
   0x2   :  { %11 = vsyncpa [#allocation6], 0 }
   0x3   :  { %12 = vsyncpa [#allocation11], 0  ;;  %s18_s14 = sshll.u32 %s1060_s0, 4  ;;  %s983_s15 = smov [#allocation4]   ;;  %s19_s14 = int_to_ptr.hbm [resolvable:$true] %s18_s14 }
   0x4   :  { %s20_s16 = sshll.u32 %s983_s15, 4  ;;  %s28_s19 = sshll.u32 %s1061_s1, 4  ;;  %s21_s16 = int_to_ptr.vmem [resolvable:$true] %s20_s16  ;;  %s29_s19 = int_to_ptr.hbm [resolvable:$true] %s28_s19 }
   0x5   :  { %23 = dma.hbm_to_vmem [thread:$0]  %s19_s14, 1024, %s21_s16, [#allocation5]  }
   0x6   :  { %s984_s20 = smov [#allocation7]   ;;  %s985_s22 = smov 128  }
   0x7   :  { %s30_s21 = sshll.u32 %s984_s20, 4  ;;  %s986_s23 = smov 8   ;;  %s31_s21 = int_to_ptr.vmem [resolvable:$true] %s30_s21 }
   0x8   :  { %36 = dma.hbm_to_vmem [thread:$0]  %s29_s19, 16384, %s31_s21, [#allocation8], %s985_s22, %s985_s22, %s986_s23  }
   0x9   :  { %975 = dma.done.wait [#allocation5], 1024  }
   0xa   :  { %976 = vsyncadd [#allocation5], 4294966272 }
   0xb   :  { %977 = dma.done.wait [#allocation8], 16384  }
   0xc   :  { %978 = vsyncadd [#allocation8], 4294950912  ;;  %v89_v0 = vld [vmem:[#allocation7 + $0x78] sm:$0xff]  ;;  %v88_v2 = vld [vmem:[#allocation7 + $0x70] sm:$0xff]  ;;  %vm651_vm0 = vcmask 1040384   ;;  %vm602_vm1 = vcmask 7168  }
   0xd   :  { %v121_v1 = vld [vmem:[#allocation7 + $0x178] sm:$0xff]  ;;  %202 = vmatpush.msra.mxu0 %v89_v0  ;;  %v120_v4 = vld [vmem:[#allocation7 + $0x170] sm:$0xff]  ;;  %v87_v6 = vld [vmem:[#allocation7 + $0x68] sm:$0xff]  ;;  %vm419_vm2 = vcmask 64512   ;;  %s988_s0 = smov [#allocation9]   ;;  %s808_s26 = sshll.u32 %s1062_s2, 4  ;;  %s809_s26 = int_to_ptr.hbm [resolvable:$true] %s808_s26 }
   0xe   :  { %242 = vmatpush.msra.mxu2 %v121_v1  ;;  %v105_v3 = vld [vmem:[#allocation7 + $0xf8] sm:$0xff]  ;;  %v104_v7 = vld [vmem:[#allocation7 + $0xf0] sm:$0xff]  ;;  %v119_v8 = vld [vmem:[#allocation7 + $0x168] sm:$0xff]  ;;  %s806_s1 = sshll.u32 %s988_s0, 4  ;;  %s989_s2 = smov [#allocation10]   ;;  %s807_s1 = int_to_ptr.vmem [resolvable:$true] %s806_s1 }
   0xf   :  { %v137_v5 = vld [vmem:[#allocation7 + $0x1f8] sm:$0xff]  ;;  %222 = vmatpush.msra.mxu1 %v105_v3  ;;  %203 = vmatpush.msra.mxu0 %v88_v2  ;;  %v136_v9 = vld [vmem:[#allocation7 + $0x1f0] sm:$0xff]  ;;  %v103_v10 = vld [vmem:[#allocation7 + $0xe8] sm:$0xff]  ;;  %s816_s27 = sshll.u32 %s989_s2, 4  ;;  %s818_s30 = sshll.u32 %s1063_s3, 4  ;;  %s817_s27 = int_to_ptr.vmem [resolvable:$true] %s816_s27  ;;  %s819_s30 = int_to_ptr.hbm [resolvable:$true] %s818_s30 }
  0x10   :  { %262 = vmatpush.msra.mxu3 %v137_v5  ;;  %243 = vmatpush.msra.mxu2 %v120_v4  ;;  %v86_v11 = vld [vmem:[#allocation7 + $0x60] sm:$0xff]  ;;  %v135_v13 = vld [vmem:[#allocation7 + $0x1e8] sm:$0xff]  ;;  %v85_v16 = vld [vmem:[#allocation7 + $0x58] sm:$0xff] }
  0x11   :  { %223 = vmatpush.msra.mxu1 %v104_v7  ;;  %v118_v12 = vld [vmem:[#allocation7 + $0x160] sm:$0xff]  ;;  %204 = vmatpush.msra.mxu0 %v87_v6  ;;  %v117_v17 = vld [vmem:[#allocation7 + $0x158] sm:$0xff]  ;;  %v84_v20 = vld [vmem:[#allocation7 + $0x50] sm:$0xff] }
  0x12   :  { %263 = vmatpush.msra.mxu3 %v136_v9  ;;  %244 = vmatpush.msra.mxu2 %v119_v8  ;;  %v102_v14 = vld [vmem:[#allocation7 + $0xe0] sm:$0xff]  ;;  %v101_v18 = vld [vmem:[#allocation7 + $0xd8] sm:$0xff]  ;;  %v116_v21 = vld [vmem:[#allocation7 + $0x150] sm:$0xff] }
  0x13   :  { %v134_v15 = vld [vmem:[#allocation7 + $0x1e0] sm:$0xff]  ;;  %224 = vmatpush.msra.mxu1 %v103_v10  ;;  %205 = vmatpush.msra.mxu0 %v86_v11  ;;  %v133_v19 = vld [vmem:[#allocation7 + $0x1d8] sm:$0xff]  ;;  %v100_v22 = vld [vmem:[#allocation7 + $0xd0] sm:$0xff] }
  0x14   :  { %264 = vmatpush.msra.mxu3 %v135_v13  ;;  %245 = vmatpush.msra.mxu2 %v118_v12  ;;  %v132_v23 = vld [vmem:[#allocation7 + $0x1d0] sm:$0xff]  ;;  %v83_v24 = vld [vmem:[#allocation7 + $0x48] sm:$0xff]  ;;  %v82_v28 = vld [vmem:[#allocation7 + $0x40] sm:$0xff] }
  0x15   :  { %225 = vmatpush.msra.mxu1 %v102_v14  ;;  %206 = vmatpush.msra.mxu0 %v85_v16  ;;  %v115_v25 = vld [vmem:[#allocation7 + $0x148] sm:$0xff]  ;;  %v114_v29 = vld [vmem:[#allocation7 + $0x140] sm:$0xff]  ;;  %v81_v32 = vld [vmem:[#allocation7 + $0x38] sm:$0xff] }
  0x16   :  { %265 = vmatpush.msra.mxu3 %v134_v15  ;;  %246 = vmatpush.msra.mxu2 %v117_v17  ;;  %v99_v26 = vld [vmem:[#allocation7 + $0xc8] sm:$0xff]  ;;  %v98_v30 = vld [vmem:[#allocation7 + $0xc0] sm:$0xff]  ;;  %v113_v33 = vld [vmem:[#allocation7 + $0x138] sm:$0xff] }
  0x17   :  { %226 = vmatpush.msra.mxu1 %v101_v18  ;;  %207 = vmatpush.msra.mxu0 %v84_v20  ;;  %v131_v27 = vld [vmem:[#allocation7 + $0x1c8] sm:$0xff]  ;;  %v130_v31 = vld [vmem:[#allocation7 + $0x1c0] sm:$0xff]  ;;  %v97_v34 = vld [vmem:[#allocation7 + $0xb8] sm:$0xff] }
  0x18   :  { %266 = vmatpush.msra.mxu3 %v133_v19  ;;  %247 = vmatpush.msra.mxu2 %v116_v21  ;;  %v129_v35 = vld [vmem:[#allocation7 + $0x1b8] sm:$0xff]  ;;  %v80_v36 = vld [vmem:[#allocation7 + $0x30] sm:$0xff]  ;;  %v79_v40 = vld [vmem:[#allocation7 + $0x28] sm:$0xff] }
  0x19   :  { %227 = vmatpush.msra.mxu1 %v100_v22  ;;  %208 = vmatpush.msra.mxu0 %v83_v24  ;;  %v112_v37 = vld [vmem:[#allocation7 + $0x130] sm:$0xff]  ;;  %v111_v41 = vld [vmem:[#allocation7 + $0x128] sm:$0xff]  ;;  %v78_v44 = vld [vmem:[#allocation7 + $0x20] sm:$0xff] }
  0x1a   :  { %267 = vmatpush.msra.mxu3 %v132_v23  ;;  %248 = vmatpush.msra.mxu2 %v115_v25  ;;  %v96_v38 = vld [vmem:[#allocation7 + $0xb0] sm:$0xff]  ;;  %v95_v42 = vld [vmem:[#allocation7 + $0xa8] sm:$0xff]  ;;  %v110_v45 = vld [vmem:[#allocation7 + $0x120] sm:$0xff] }
  0x1b   :  { %228 = vmatpush.msra.mxu1 %v99_v26  ;;  %209 = vmatpush.msra.mxu0 %v82_v28  ;;  %v128_v39 = vld [vmem:[#allocation7 + $0x1b0] sm:$0xff]  ;;  %v127_v43 = vld [vmem:[#allocation7 + $0x1a8] sm:$0xff]  ;;  %v94_v46 = vld [vmem:[#allocation7 + $0xa0] sm:$0xff] }
  0x1c   :  { %268 = vmatpush.msra.mxu3 %v131_v27  ;;  %249 = vmatpush.msra.mxu2 %v114_v29  ;;  %v126_v47 = vld [vmem:[#allocation7 + $0x1a0] sm:$0xff]  ;;  %v77_v48 = vld [vmem:[#allocation7 + $0x18] sm:$0xff]  ;;  %v76_v52 = vld [vmem:[#allocation7 + $0x10] sm:$0xff] }
  0x1d   :  { %229 = vmatpush.msra.mxu1 %v98_v30  ;;  %210 = vmatpush.msra.mxu0 %v81_v32  ;;  %v109_v49 = vld [vmem:[#allocation7 + $0x118] sm:$0xff]  ;;  %v108_v53 = vld [vmem:[#allocation7 + $0x110] sm:$0xff]  ;;  %v75_v56 = vld [vmem:[#allocation7 + $0x8] sm:$0xff] }
  0x1e   :  { %269 = vmatpush.msra.mxu3 %v130_v31  ;;  %250 = vmatpush.msra.mxu2 %v113_v33  ;;  %v93_v50 = vld [vmem:[#allocation7 + $0x98] sm:$0xff]  ;;  %v92_v54 = vld [vmem:[#allocation7 + $0x90] sm:$0xff]  ;;  %v107_v57 = vld [vmem:[#allocation7 + $0x108] sm:$0xff] }
  0x1f   :  { %230 = vmatpush.msra.mxu1 %v97_v34  ;;  %211 = vmatpush.msra.mxu0 %v80_v36  ;;  %v125_v51 = vld [vmem:[#allocation7 + $0x198] sm:$0xff]  ;;  %v124_v55 = vld [vmem:[#allocation7 + $0x190] sm:$0xff]  ;;  %v91_v58 = vld [vmem:[#allocation7 + $0x88] sm:$0xff] }
  0x20   :  { %270 = vmatpush.msra.mxu3 %v129_v35  ;;  %251 = vmatpush.msra.mxu2 %v112_v37  ;;  %v123_v59 = vld [vmem:[#allocation7 + $0x188] sm:$0xff]  ;;  %v74_v60 = vld [vmem:[#allocation7] sm:$0xff]  ;;  %v153_v62 = vld [vmem:[#allocation7 + $0x278] sm:$0xff] }
  0x21   :  { %231 = vmatpush.msra.mxu1 %v96_v38  ;;  %212 = vmatpush.msra.mxu0 %v79_v40  ;;  %v106_v61 = vld [vmem:[#allocation7 + $0x100] sm:$0xff]  ;;  %v185_v63 = vld [vmem:[#allocation7 + $0x378] sm:$0xff]  ;;  %v152_v2 = vld [vmem:[#allocation7 + $0x270] sm:$0xff] }
  0x22   :  { %271 = vmatpush.msra.mxu3 %v128_v39  ;;  %252 = vmatpush.msra.mxu2 %v111_v41  ;;  %v90_v0 = vld [vmem:[#allocation7 + $0x80] sm:$0xff]  ;;  %v169_v3 = vld [vmem:[#allocation7 + $0x2f8] sm:$0xff]  ;;  %v184_v4 = vld [vmem:[#allocation7 + $0x370] sm:$0xff] }
  0x23   :  { %232 = vmatpush.msra.mxu1 %v95_v42  ;;  %213 = vmatpush.msra.mxu0 %v78_v44  ;;  %v122_v1 = vld [vmem:[#allocation7 + $0x180] sm:$0xff]  ;;  %v201_v5 = vld [vmem:[#allocation7 + $0x3f8] sm:$0xff]  ;;  %v151_v6 = vld [vmem:[#allocation7 + $0x268] sm:$0xff] }
  0x24   :  { %272 = vmatpush.msra.mxu3 %v127_v43  ;;  %253 = vmatpush.msra.mxu2 %v110_v45  ;;  %v168_v7 = vld [vmem:[#allocation7 + $0x2f0] sm:$0xff]  ;;  %v183_v8 = vld [vmem:[#allocation7 + $0x368] sm:$0xff]  ;;  %v150_v10 = vld [vmem:[#allocation7 + $0x260] sm:$0xff] }
  0x25   :  { %233 = vmatpush.msra.mxu1 %v94_v46  ;;  %214 = vmatpush.msra.mxu0 %v77_v48  ;;  %v200_v9 = vld [vmem:[#allocation7 + $0x3f0] sm:$0xff]  ;;  %v167_v11 = vld [vmem:[#allocation7 + $0x2e8] sm:$0xff]  ;;  %v182_v12 = vld [vmem:[#allocation7 + $0x360] sm:$0xff] }
  0x26   :  { %273 = vmatpush.msra.mxu3 %v126_v47  ;;  %254 = vmatpush.msra.mxu2 %v109_v49  ;;  %v199_v13 = vld [vmem:[#allocation7 + $0x3e8] sm:$0xff]  ;;  %v149_v14 = vld [vmem:[#allocation7 + $0x258] sm:$0xff]  ;;  %v166_v15 = vld [vmem:[#allocation7 + $0x2e0] sm:$0xff] }
  0x27   :  { %234 = vmatpush.msra.mxu1 %v93_v50  ;;  %215 = vmatpush.msra.mxu0 %v76_v52  ;;  %v181_v16 = vld [vmem:[#allocation7 + $0x358] sm:$0xff]  ;;  %v198_v17 = vld [vmem:[#allocation7 + $0x3e0] sm:$0xff]  ;;  %v148_v18 = vld [vmem:[#allocation7 + $0x250] sm:$0xff] }
  0x28   :  { %274 = vmatpush.msra.mxu3 %v125_v51  ;;  %255 = vmatpush.msra.mxu2 %v108_v53  ;;  %v165_v19 = vld [vmem:[#allocation7 + $0x2d8] sm:$0xff]  ;;  %v180_v20 = vld [vmem:[#allocation7 + $0x350] sm:$0xff]  ;;  %v147_v22 = vld [vmem:[#allocation7 + $0x248] sm:$0xff] }
  0x29   :  { %235 = vmatpush.msra.mxu1 %v92_v54  ;;  %216 = vmatpush.msra.mxu0 %v75_v56  ;;  %v197_v21 = vld [vmem:[#allocation7 + $0x3d8] sm:$0xff]  ;;  %v164_v23 = vld [vmem:[#allocation7 + $0x2d0] sm:$0xff]  ;;  %v179_v24 = vld [vmem:[#allocation7 + $0x348] sm:$0xff] }
  0x2a   :  { %275 = vmatpush.msra.mxu3 %v124_v55  ;;  %256 = vmatpush.msra.mxu2 %v107_v57  ;;  %v196_v25 = vld [vmem:[#allocation7 + $0x3d0] sm:$0xff]  ;;  %v146_v26 = vld [vmem:[#allocation7 + $0x240] sm:$0xff]  ;;  %v163_v27 = vld [vmem:[#allocation7 + $0x2c8] sm:$0xff] }
  0x2b   :  { %236 = vmatpush.msra.mxu1 %v91_v58  ;;  %217 = vmatpush.msra.mxu0 %v74_v60  ;;  %v178_v28 = vld [vmem:[#allocation7 + $0x340] sm:$0xff]  ;;  %v195_v29 = vld [vmem:[#allocation7 + $0x3c8] sm:$0xff]  ;;  %v145_v30 = vld [vmem:[#allocation7 + $0x238] sm:$0xff] }
  0x2c   :  { %276 = vmatpush.msra.mxu3 %v123_v59  ;;  %257 = vmatpush.msra.mxu2 %v106_v61  ;;  %v162_v31 = vld [vmem:[#allocation7 + $0x2c0] sm:$0xff]  ;;  %v177_v32 = vld [vmem:[#allocation7 + $0x338] sm:$0xff]  ;;  %v144_v34 = vld [vmem:[#allocation7 + $0x230] sm:$0xff] }
  0x2d   :  { %282 = vmatpush.msrb.mxu0 %v153_v62  ;;  %237 = vmatpush.msra.mxu1 %v90_v0  ;;  %v194_v33 = vld [vmem:[#allocation7 + $0x3c0] sm:$0xff]  ;;  %v161_v35 = vld [vmem:[#allocation7 + $0x2b8] sm:$0xff]  ;;  %v176_v36 = vld [vmem:[#allocation7 + $0x330] sm:$0xff] }
  0x2e   :  { %322 = vmatpush.msrb.mxu2 %v185_v63  ;;  %277 = vmatpush.msra.mxu3 %v122_v1  ;;  %v193_v37 = vld [vmem:[#allocation7 + $0x3b8] sm:$0xff]  ;;  %v143_v38 = vld [vmem:[#allocation7 + $0x228] sm:$0xff]  ;;  %v160_v39 = vld [vmem:[#allocation7 + $0x2b0] sm:$0xff] }
  0x2f   :  { %283 = vmatpush.msrb.mxu0 %v152_v2  ;;  %302 = vmatpush.msrb.mxu1 %v169_v3  ;;  %v175_v40 = vld [vmem:[#allocation7 + $0x328] sm:$0xff]  ;;  %v192_v41 = vld [vmem:[#allocation7 + $0x3b0] sm:$0xff]  ;;  %v142_v43 = vld [vmem:[#allocation7 + $0x220] sm:$0xff] }
  0x30   :  { %323 = vmatpush.msrb.mxu2 %v184_v4  ;;  %342 = vmatpush.msrb.mxu3 %v201_v5  ;;  %v68_v42 = vld [vmem:[#allocation4 + $0x10] sm:$0xff]  ;;  %v159_v44 = vld [vmem:[#allocation7 + $0x2a8] sm:$0xff]  ;;  %v174_v45 = vld [vmem:[#allocation7 + $0x320] sm:$0xff] }
  0x31   :  { %284 = vmatpush.msrb.mxu0 %v151_v6  ;;  %303 = vmatpush.msrb.mxu1 %v168_v7  ;;  %v191_v46 = vld [vmem:[#allocation7 + $0x3a8] sm:$0xff]  ;;  %v66_v47 = vld [vmem:[#allocation4] sm:$0xff]  ;;  %v69_v48 = vld [vmem:[#allocation4 + $0x18] sm:$0xff] }
  0x32   :  { %324 = vmatpush.msrb.mxu2 %v183_v8  ;;  %343 = vmatpush.msrb.mxu3 %v200_v9  ;;  %v141_v49 = vld [vmem:[#allocation7 + $0x218] sm:$0xff]  ;;  %v158_v50 = vld [vmem:[#allocation7 + $0x2a0] sm:$0xff]  ;;  %v67_v53 = vld [vmem:[#allocation4 + $0x8] sm:$0xff]  ;;  %v987_v8 = vmov 0.0  }
  0x33   :  { %285 = vmatpush.msrb.mxu0 %v150_v10  ;;  %304 = vmatpush.msrb.mxu1 %v167_v11  ;;  %v173_v51 = vld [vmem:[#allocation7 + $0x318] sm:$0xff]  ;;  %v190_v52 = vld [vmem:[#allocation7 + $0x3a0] sm:$0xff]  ;;  %v140_v54 = vld [vmem:[#allocation7 + $0x210] sm:$0xff]  ;;  %49 = vst [vmem:[#allocation2] sm:$0x1] %v987_v8 }
  0x34   :  { %325 = vmatpush.msrb.mxu2 %v182_v12  ;;  %344 = vmatpush.msrb.mxu3 %v199_v13  ;;  %v157_v55 = vld [vmem:[#allocation7 + $0x298] sm:$0xff]  ;;  %v172_v56 = vld [vmem:[#allocation7 + $0x310] sm:$0xff]  ;;  %v139_v58 = vld [vmem:[#allocation7 + $0x208] sm:$0xff] }
  0x35   :  { %286 = vmatpush.msrb.mxu0 %v149_v14  ;;  %305 = vmatpush.msrb.mxu1 %v166_v15  ;;  %v189_v57 = vld [vmem:[#allocation7 + $0x398] sm:$0xff]  ;;  %v156_v59 = vld [vmem:[#allocation7 + $0x290] sm:$0xff]  ;;  %v171_v60 = vld [vmem:[#allocation7 + $0x308] sm:$0xff] }
  0x36   :  { %326 = vmatpush.msrb.mxu2 %v181_v16  ;;  %345 = vmatpush.msrb.mxu3 %v198_v17  ;;  %v188_v61 = vld [vmem:[#allocation7 + $0x390] sm:$0xff]  ;;  %v138_v62 = vld [vmem:[#allocation7 + $0x200] sm:$0xff]  ;;  %v155_v63 = vld [vmem:[#allocation7 + $0x288] sm:$0xff] }
  0x37   :  { %287 = vmatpush.msrb.mxu0 %v148_v18  ;;  %306 = vmatpush.msrb.mxu1 %v165_v19  ;;  %v170_v0 = vld [vmem:[#allocation7 + $0x300] sm:$0xff]  ;;  %v187_v1 = vld [vmem:[#allocation7 + $0x388] sm:$0xff]  ;;  %v72_v3 = vld [vmem:[#allocation4 + $0x30] sm:$0xff] }
  0x38   :  { %327 = vmatpush.msrb.mxu2 %v180_v20  ;;  %346 = vmatpush.msrb.mxu3 %v197_v21  ;;  %v70_v2 = vld [vmem:[#allocation4 + $0x20] sm:$0xff]  ;;  %v71_v6 = vld [vmem:[#allocation4 + $0x28] sm:$0xff]  ;;  %v73_v7 = vld [vmem:[#allocation4 + $0x38] sm:$0xff] }
  0x39   :  { %288 = vmatpush.msrb.mxu0 %v147_v22  ;;  %307 = vmatpush.msrb.mxu1 %v164_v23  ;;  %v154_v4 = vld [vmem:[#allocation7 + $0x280] sm:$0xff] }
  0x3a   :  { %328 = vmatpush.msrb.mxu2 %v179_v24  ;;  %347 = vmatpush.msrb.mxu3 %v196_v25  ;;  %v186_v5 = vld [vmem:[#allocation7 + $0x380] sm:$0xff] }
  0x3b   :  { %289 = vmatpush.msrb.mxu0 %v146_v26  ;;  %308 = vmatpush.msrb.mxu1 %v163_v27 }
  0x3c   :  { %329 = vmatpush.msrb.mxu2 %v178_v28  ;;  %348 = vmatpush.msrb.mxu3 %v195_v29  ;;  %v362_v29 = vld [vmem:[#allocation2] sm:$0x1] }
  0x3d   :  { %290 = vmatpush.msrb.mxu0 %v145_v30  ;;  %309 = vmatpush.msrb.mxu1 %v162_v31 }
  0x3e   :  { %330 = vmatpush.msrb.mxu2 %v177_v32  ;;  %349 = vmatpush.msrb.mxu3 %v194_v33 }
  0x3f   :  { %291 = vmatpush.msrb.mxu0 %v144_v34  ;;  %310 = vmatpush.msrb.mxu1 %v161_v35 }
  0x40   :  { %331 = vmatpush.msrb.mxu2 %v176_v36  ;;  %350 = vmatpush.msrb.mxu3 %v193_v37 }
  0x41   :  { %292 = vmatpush.msrb.mxu0 %v143_v38  ;;  %311 = vmatpush.msrb.mxu1 %v160_v39 }
  0x42   :  { %332 = vmatpush.msrb.mxu2 %v175_v40  ;;  %351 = vmatpush.msrb.mxu3 %v192_v41 }
  0x43   :  { %258 = vmatmul.f32.vlgmr.msra.gmra.mxu2 %v68_v42  ;;  %293 = vmatpush.msrb.mxu0 %v142_v43 }
  0x44   :  { %312 = vmatpush.msrb.mxu1 %v159_v44  ;;  %333 = vmatpush.msrb.mxu2 %v174_v45 }
  0x45   :  { %352 = vmatpush.msrb.mxu3 %v191_v46  ;;  %218 = vmatmul.f32.vlgmr.msra.gmra.mxu0 %v66_v47 }
  0x46   :  { %278 = vmatmul.f32.vlgmr.msra.gmra.mxu3 %v69_v48  ;;  %294 = vmatpush.msrb.mxu0 %v141_v49 }
  0x47   :  { %313 = vmatpush.msrb.mxu1 %v158_v50  ;;  %334 = vmatpush.msrb.mxu2 %v173_v51 }
  0x48   :  { %353 = vmatpush.msrb.mxu3 %v190_v52  ;;  %238 = vmatmul.f32.vlgmr.msra.gmra.mxu1 %v67_v53 }
  0x49   :  { %295 = vmatpush.msrb.mxu0 %v140_v54  ;;  %314 = vmatpush.msrb.mxu1 %v157_v55 }
  0x4a   :  { %335 = vmatpush.msrb.mxu2 %v172_v56  ;;  %354 = vmatpush.msrb.mxu3 %v189_v57 }
  0x4b   :  { %296 = vmatpush.msrb.mxu0 %v139_v58  ;;  %315 = vmatpush.msrb.mxu1 %v156_v59 }
  0x4c   :  { %336 = vmatpush.msrb.mxu2 %v171_v60  ;;  %355 = vmatpush.msrb.mxu3 %v188_v61 }
  0x4d   :  { %297 = vmatpush.msrb.mxu0 %v138_v62  ;;  %316 = vmatpush.msrb.mxu1 %v155_v63 }
  0x4e   :  { %337 = vmatpush.msrb.mxu2 %v170_v0  ;;  %356 = vmatpush.msrb.mxu3 %v187_v1 }
  0x4f   :  { %298 = vmatmul.f32.vlgmr.msrb.gmra.mxu0 %v70_v2  ;;  %338 = vmatmul.f32.vlgmr.msrb.gmra.mxu2 %v72_v3 }
  0x50   :  { %317 = vmatpush.msrb.mxu1 %v154_v4  ;;  %357 = vmatpush.msrb.mxu3 %v186_v5 }
  0x51   :  { %318 = vmatmul.f32.vlgmr.msrb.gmra.mxu1 %v71_v6  ;;  %358 = vmatmul.f32.vlgmr.msrb.gmra.mxu3 %v73_v7 }
  0xc2   :  { %v219_v9 = vpop.f32.mrf.mxu0 }
  0xc5   :  { %v239_v10 = vpop.f32.mrf.mxu1 }
  0xc6   :  { %v240_v11 = vadd.f32 %v239_v10, %v219_v9  ;;  %v259_v12 = vpop.f32.mrf.mxu2 }
  0xc8   :  { %v260_v13 = vadd.f32 %v259_v12, %v240_v11 }
  0xc9   :  { %v279_v14 = vpop.f32.mrf.mxu3 }
  0xca   :  { %v280_v15 = vadd.f32 %v279_v14, %v260_v13 }
  0xcc   :  { %v299_v16 = vpop.f32.mrf.mxu0 }
  0xcd   :  { %v300_v17 = vadd.f32 %v299_v16, %v280_v15 }
  0xce   :  { %v319_v18 = vpop.f32.mrf.mxu1 }
  0xcf   :  { %v320_v19 = vadd.f32 %v319_v18, %v300_v17 }
  0xd2   :  { %v339_v20 = vpop.f32.mrf.mxu2 }
  0xd3   :  { %v340_v21 = vadd.f32 %v339_v20, %v320_v19 }
  0xd4   :  { %v359_v22 = vpop.f32.mrf.mxu3 }
  0xd5   :  { %v360_v23 = vadd.f32 %v359_v22, %v340_v21 }
  0xd7   :  { %v363_v24 = vrot.slane %v360_v23, 4  ;;  %483 = vmatpush.msra.mxu0 %v360_v23  ;;  %870 = vmatpush.msra.mxu2 %v360_v23 }
  0xd9   :  { %v364_v25 = vadd.f32 %v363_v24, %v360_v23 }
  0xdb   :  { %v365_v26 = vrot.slane %v364_v25, 2 }
  0xdd   :  { %v366_v27 = vadd.f32 %v365_v26, %v364_v25 }
  0xdf   :  { %v367_v28 = vrot.slane %v366_v27, 1 }
  0xe1   :  { %v368_v30 = vadd.f32 %v367_v28, %v366_v27 }
  0xe3   :  { %v369_v31 = vadd.f32 %v368_v30, %v362_v29 }
  0xe5   :  { %370 = vst [vmem:[#allocation2] sm:$0x1] %v369_v31 }
  0xec   :  { %v568_v32 = vld [vmem:[#allocation2] sm:$0x1] }
  0xed   :  { %v569_v33 = vmul.f32 0.125, %v568_v32 }
  0xef   :  { %570 = vxpose.xlu0.b32.start.end [1/1] (short) %v569_v33, 128  ;;  %800 = vst [vmem:[#allocation9] sm:$0x1] %v569_v33  ;;  %853 = vmatpush.msk.msra.mxu1 %vm651_vm0, %v569_v33 }
  0xf0   :  { %871 = vmatpush.msk.msra.mxu3 %vm651_vm0, %v569_v33  ;;  %811 = dma.vmem_to_hbm [thread:$0]  %s807_s1, 16, %s809_s26, [#allocation6]  }
 0x16f   :  { %387 = vxpose.xlu0.b32.start.end [1/1] (short) %v360_v23, 128 }
 0x193   :  { %v586_v34 = vpop.trf.xlu0 }
 0x194   :  { %854 = vmatmul.msk.f32.vlgmr.msra.gmra.mxu1 %vm602_vm1, %v586_v34 }
 0x19b   :  { %v587_v35 = vpop.trf.xlu0 }
 0x19c   :  { %855 = vmatmul.msk.f32.gmra.mxu1 %vm602_vm1, %v587_v35 }
 0x1a3   :  { %v588_v36 = vpop.trf.xlu0 }
 0x1a4   :  { %856 = vmatmul.msk.f32.gmra.mxu1 %vm602_vm1, %v588_v36 }
 0x1ab   :  { %v589_v37 = vpop.trf.xlu0 }
 0x1ac   :  { %857 = vmatmul.msk.f32.gmra.mxu1 %vm602_vm1, %v589_v37 }
 0x1b3   :  { %v590_v38 = vpop.trf.xlu0 }
 0x1b4   :  { %858 = vmatmul.msk.f32.gmra.mxu1 %vm602_vm1, %v590_v38 }
 0x1bb   :  { %v591_v39 = vpop.trf.xlu0 }
 0x1bc   :  { %859 = vmatmul.msk.f32.gmra.mxu1 %vm602_vm1, %v591_v39 }
 0x1c3   :  { %v592_v40 = vpop.trf.xlu0 }
 0x1c4   :  { %860 = vmatmul.msk.f32.gmra.mxu1 %vm602_vm1, %v592_v40 }
 0x1cb   :  { %v593_v41 = vpop.trf.xlu0 }
 0x1cc   :  { %861 = vmatmul.msk.f32.gmra.mxu1 %vm602_vm1, %v593_v41 }
 0x1d3   :  { %v594_v42 = vpop.trf.xlu0 }
 0x1d4   :  { %862 = vmatmul.msk.f32.vlgmr.msra.gmra.mxu3 %vm602_vm1, %v594_v42 }
 0x1db   :  { %v595_v43 = vpop.trf.xlu0 }
 0x1dc   :  { %863 = vmatmul.msk.f32.gmra.mxu3 %vm602_vm1, %v595_v43 }
 0x1e3   :  { %v596_v44 = vpop.trf.xlu0 }
 0x1e4   :  { %864 = vmatmul.msk.f32.gmra.mxu3 %vm602_vm1, %v596_v44 }
 0x1eb   :  { %v597_v45 = vpop.trf.xlu0 }
 0x1ec   :  { %865 = vmatmul.msk.f32.gmra.mxu3 %vm602_vm1, %v597_v45 }
 0x1f3   :  { %v598_v46 = vpop.trf.xlu0 }
 0x1f4   :  { %866 = vmatmul.msk.f32.gmra.mxu3 %vm602_vm1, %v598_v46 }
 0x1fb   :  { %v599_v47 = vpop.trf.xlu0 }
 0x1fc   :  { %867 = vmatmul.msk.f32.gmra.mxu3 %vm602_vm1, %v599_v47 }
 0x203   :  { %v600_v48 = vpop.trf.xlu0 }
 0x204   :  { %868 = vmatmul.msk.f32.gmra.mxu3 %vm602_vm1, %v600_v48 }
 0x20b   :  { %v601_v49 = vpop.trf.xlu0 }
 0x20c   :  { %869 = vmatmul.msk.f32.gmra.mxu3 %vm602_vm1, %v601_v49 }
 0x211   :  { %v672_v0 = vpop.f32.mrf.mxu1 }
 0x212   :  { %v736_v4 = vmul.f32 8.0, %v672_v0 }
 0x213   :  { %v403_v50 = vpop.trf.xlu0 }
 0x214   :  { %837 = vmatmul.msk.f32.vlgmr.msra.gmra.mxu0 %vm419_vm2, %v403_v50 }
 0x219   :  { %v675_v2 = vpop.f32.mrf.mxu1 }
 0x21a   :  { %v737_v9 = vmul.f32 8.0, %v675_v2 }
 0x21b   :  { %v404_v51 = vpop.trf.xlu0 }
 0x21c   :  { %838 = vmatmul.msk.f32.gmra.mxu0 %vm419_vm2, %v404_v51 }
 0x221   :  { %v678_v7 = vpop.f32.mrf.mxu1 }
 0x222   :  { %v738_v14 = vmul.f32 8.0, %v678_v7 }
 0x223   :  { %v405_v52 = vpop.trf.xlu0 }
 0x224   :  { %839 = vmatmul.msk.f32.gmra.mxu0 %vm419_vm2, %v405_v52 }
 0x229   :  { %v681_v13 = vpop.f32.mrf.mxu1 }
 0x22a   :  { %v739_v19 = vmul.f32 8.0, %v681_v13 }
 0x22b   :  { %v406_v53 = vpop.trf.xlu0 }
 0x22c   :  { %840 = vmatmul.msk.f32.gmra.mxu0 %vm419_vm2, %v406_v53 }
 0x231   :  { %v684_v18 = vpop.f32.mrf.mxu1 }
 0x232   :  { %v740_v23 = vmul.f32 8.0, %v684_v18 }
 0x233   :  { %v407_v54 = vpop.trf.xlu0 }
 0x234   :  { %841 = vmatmul.msk.f32.gmra.mxu0 %vm419_vm2, %v407_v54 }
 0x239   :  { %v687_v24 = vpop.f32.mrf.mxu1 }
 0x23a   :  { %v741_v28 = vmul.f32 8.0, %v687_v24 }
 0x23b   :  { %v408_v55 = vpop.trf.xlu0 }
 0x23c   :  { %842 = vmatmul.msk.f32.gmra.mxu0 %vm419_vm2, %v408_v55 }
 0x241   :  { %v690_v31 = vpop.f32.mrf.mxu1 }
 0x242   :  { %v742_v33 = vmul.f32 8.0, %v690_v31 }
 0x243   :  { %v409_v56 = vpop.trf.xlu0 }
 0x244   :  { %843 = vmatmul.msk.f32.gmra.mxu0 %vm419_vm2, %v409_v56 }
 0x249   :  { %v693_v37 = vpop.f32.mrf.mxu1 }
 0x24a   :  { %v743_v39 = vmul.f32 8.0, %v693_v37 }
 0x24b   :  { %v410_v57 = vpop.trf.xlu0 }
 0x24c   :  { %844 = vmatmul.msk.f32.gmra.mxu0 %vm419_vm2, %v410_v57 }
 0x253   :  { %v411_v58 = vpop.trf.xlu0 }
 0x254   :  { %845 = vmatmul.msk.f32.vlgmr.msra.gmra.mxu2 %vm419_vm2, %v411_v58 }
 0x257   :  { %v696_v38 = vpop.f32.mrf.mxu3 }
 0x258   :  { %v744_v44 = vmul.f32 8.0, %v696_v38 }
 0x25b   :  { %v412_v59 = vpop.trf.xlu0 }
 0x25c   :  { %846 = vmatmul.msk.f32.gmra.mxu2 %vm419_vm2, %v412_v59 }
 0x25f   :  { %v699_v43 = vpop.f32.mrf.mxu3 }
 0x260   :  { %v745_v49 = vmul.f32 8.0, %v699_v43 }
 0x263   :  { %v413_v60 = vpop.trf.xlu0 }
 0x264   :  { %847 = vmatmul.msk.f32.gmra.mxu2 %vm419_vm2, %v413_v60 }
 0x267   :  { %v702_v47 = vpop.f32.mrf.mxu3 }
 0x268   :  { %v746_v54 = vmul.f32 8.0, %v702_v47 }
 0x26b   :  { %v414_v61 = vpop.trf.xlu0 }
 0x26c   :  { %848 = vmatmul.msk.f32.gmra.mxu2 %vm419_vm2, %v414_v61 }
 0x26f   :  { %v705_v53 = vpop.f32.mrf.mxu3 }
 0x270   :  { %v747_v59 = vmul.f32 8.0, %v705_v53 }
 0x273   :  { %v415_v62 = vpop.trf.xlu0 }
 0x274   :  { %849 = vmatmul.msk.f32.gmra.mxu2 %vm419_vm2, %v415_v62 }
 0x277   :  { %v708_v58 = vpop.f32.mrf.mxu3 }
 0x27b   :  { %v416_v63 = vpop.trf.xlu0 }
 0x27c   :  { %850 = vmatmul.msk.f32.gmra.mxu2 %vm419_vm2, %v416_v63  ;;  %v748_v63 = vmul.f32 8.0, %v708_v58 }
 0x27f   :  { %v711_v0 = vpop.f32.mrf.mxu3 }
 0x283   :  { %v417_v1 = vpop.trf.xlu0 }
 0x284   :  { %851 = vmatmul.msk.f32.gmra.mxu2 %vm419_vm2, %v417_v1 }
 0x287   :  { %v714_v7 = vpop.f32.mrf.mxu3 }
 0x28b   :  { %v418_v3 = vpop.trf.xlu0 }
 0x28c   :  { %852 = vmatmul.msk.f32.gmra.mxu2 %vm419_vm2, %v418_v3 }
 0x28f   :  { %v717_v13 = vpop.f32.mrf.mxu3 }
 0x291   :  { %v485_v5 = vpop.f32.mrf.mxu0 }
 0x292   :  { %v752_v6 = vsub.f32 %v485_v5, %v736_v4  ;;  %v749_v4 = vmul.f32 8.0, %v711_v0 }
 0x294   :  { %v768_v8 = vmul.f32 0.14285715, %v752_v6 }
 0x296   :  { %784 = vst [vmem:[#allocation10] sm:$0xff] %v768_v8 }
 0x299   :  { %v488_v10 = vpop.f32.mrf.mxu0 }
 0x29a   :  { %v753_v11 = vsub.f32 %v488_v10, %v737_v9  ;;  %v750_v9 = vmul.f32 8.0, %v714_v7 }
 0x29c   :  { %v769_v12 = vmul.f32 0.14285715, %v753_v11 }
 0x29e   :  { %785 = vst [vmem:[#allocation10 + $0x8] sm:$0xff] %v769_v12 }
 0x2a1   :  { %v491_v15 = vpop.f32.mrf.mxu0 }
 0x2a2   :  { %v754_v16 = vsub.f32 %v491_v15, %v738_v14  ;;  %v751_v14 = vmul.f32 8.0, %v717_v13 }
 0x2a4   :  { %v770_v17 = vmul.f32 0.14285715, %v754_v16 }
 0x2a6   :  { %786 = vst [vmem:[#allocation10 + $0x10] sm:$0xff] %v770_v17 }
 0x2a9   :  { %v494_v20 = vpop.f32.mrf.mxu0 }
 0x2aa   :  { %v755_v21 = vsub.f32 %v494_v20, %v739_v19 }
 0x2ac   :  { %v771_v22 = vmul.f32 0.14285715, %v755_v21 }
 0x2ae   :  { %787 = vst [vmem:[#allocation10 + $0x18] sm:$0xff] %v771_v22 }
 0x2b1   :  { %v497_v25 = vpop.f32.mrf.mxu0 }
 0x2b2   :  { %v756_v26 = vsub.f32 %v497_v25, %v740_v23 }
 0x2b4   :  { %v772_v27 = vmul.f32 0.14285715, %v756_v26 }
 0x2b6   :  { %788 = vst [vmem:[#allocation10 + $0x20] sm:$0xff] %v772_v27 }
 0x2b9   :  { %v500_v29 = vpop.f32.mrf.mxu0 }
 0x2ba   :  { %v757_v30 = vsub.f32 %v500_v29, %v741_v28 }
 0x2bc   :  { %v773_v32 = vmul.f32 0.14285715, %v757_v30 }
 0x2be   :  { %789 = vst [vmem:[#allocation10 + $0x28] sm:$0xff] %v773_v32 }
 0x2c1   :  { %v503_v34 = vpop.f32.mrf.mxu0 }
 0x2c2   :  { %v758_v35 = vsub.f32 %v503_v34, %v742_v33 }
 0x2c4   :  { %v774_v36 = vmul.f32 0.14285715, %v758_v35 }
 0x2c6   :  { %790 = vst [vmem:[#allocation10 + $0x30] sm:$0xff] %v774_v36 }
 0x2c9   :  { %v506_v40 = vpop.f32.mrf.mxu0 }
 0x2ca   :  { %v759_v41 = vsub.f32 %v506_v40, %v743_v39 }
 0x2cc   :  { %v775_v42 = vmul.f32 0.14285715, %v759_v41 }
 0x2ce   :  { %791 = vst [vmem:[#allocation10 + $0x38] sm:$0xff] %v775_v42 }
 0x2d7   :  { %v509_v45 = vpop.f32.mrf.mxu2 }
 0x2d8   :  { %v760_v46 = vsub.f32 %v509_v45, %v744_v44 }
 0x2da   :  { %v776_v48 = vmul.f32 0.14285715, %v760_v46 }
 0x2dc   :  { %792 = vst [vmem:[#allocation10 + $0x40] sm:$0xff] %v776_v48 }
 0x2df   :  { %v512_v50 = vpop.f32.mrf.mxu2 }
 0x2e0   :  { %v761_v51 = vsub.f32 %v512_v50, %v745_v49 }
 0x2e2   :  { %v777_v52 = vmul.f32 0.14285715, %v761_v51 }
 0x2e4   :  { %793 = vst [vmem:[#allocation10 + $0x48] sm:$0xff] %v777_v52 }
 0x2e7   :  { %v515_v55 = vpop.f32.mrf.mxu2 }
 0x2e8   :  { %v762_v56 = vsub.f32 %v515_v55, %v746_v54 }
 0x2ea   :  { %v778_v57 = vmul.f32 0.14285715, %v762_v56 }
 0x2ec   :  { %794 = vst [vmem:[#allocation10 + $0x50] sm:$0xff] %v778_v57 }
 0x2ef   :  { %v518_v60 = vpop.f32.mrf.mxu2 }
 0x2f0   :  { %v763_v61 = vsub.f32 %v518_v60, %v747_v59 }
 0x2f2   :  { %v779_v62 = vmul.f32 0.14285715, %v763_v61 }
 0x2f4   :  { %795 = vst [vmem:[#allocation10 + $0x58] sm:$0xff] %v779_v62 }
 0x2f7   :  { %v521_v1 = vpop.f32.mrf.mxu2 }
 0x2f8   :  { %v764_v2 = vsub.f32 %v521_v1, %v748_v63 }
 0x2fa   :  { %v780_v3 = vmul.f32 0.14285715, %v764_v2 }
 0x2fc   :  { %796 = vst [vmem:[#allocation10 + $0x60] sm:$0xff] %v780_v3 }
 0x2ff   :  { %v524_v5 = vpop.f32.mrf.mxu2 }
 0x300   :  { %v765_v6 = vsub.f32 %v524_v5, %v749_v4 }
 0x302   :  { %v781_v8 = vmul.f32 0.14285715, %v765_v6 }
 0x304   :  { %797 = vst [vmem:[#allocation10 + $0x68] sm:$0xff] %v781_v8 }
 0x307   :  { %v527_v10 = vpop.f32.mrf.mxu2 }
 0x308   :  { %v766_v11 = vsub.f32 %v527_v10, %v750_v9 }
 0x30a   :  { %v782_v12 = vmul.f32 0.14285715, %v766_v11 }
 0x30c   :  { %798 = vst [vmem:[#allocation10 + $0x70] sm:$0xff] %v782_v12 }
 0x30f   :  { %v530_v15 = vpop.f32.mrf.mxu2 }
 0x310   :  { %v767_v16 = vsub.f32 %v530_v15, %v751_v14 }
 0x312   :  { %v783_v17 = vmul.f32 0.14285715, %v767_v16 }
 0x314   :  { %799 = vst [vmem:[#allocation10 + $0x78] sm:$0xff] %v783_v17 }
 0x315   :  { %824 = dma.vmem_to_hbm [thread:$0]  %s817_s27, 2048, %s819_s30, [#allocation11], %s985_s22, %s985_s22, %s986_s23  }
 0x316   :  { %979 = dma.done.wait [#allocation6], 16  }
 0x317   :  { %980 = vsyncadd [#allocation6], 4294967280 }
 0x318   :  { %981 = dma.done.wait [#allocation11], 2048  }
 0x319   :  { %982 = vsyncadd [#allocation11], 4294965248 }
 0x31a   :  { %833 = vsyncpa [#allocation5], 1 }
 0x31b   :  { %834 = vsyncpa [#allocation8], 1 }
 0x31c   :  { %835 = vsyncpa [#allocation6], 1 }
 0x31d   :  { %836 = vsyncpa [#allocation11], 1 }

</bundles_post_ra>
